<compile_context>
chip_gen: v7x
topology: tpu7x:2x2x1
jax: 0.10.0
libtpu: 0.0.40
codegen_flags: <defaults>
</compile_context>

<pallas_src>
import functools

import jax
import jax.numpy as jnp
from jax.experimental import pallas as pl
from jax.experimental.pallas import tpu as pltpu


_DEFAULT_TILE_B_CAP = 8192  # sweep 4096-8192; grid-step overhead amortizes with bigger tiles


# ---------------------------------------------------------------------------
# Kernel
# ---------------------------------------------------------------------------
def _mlp_kernel(x_ref,
                w1_ref, b1_ref,
                w2_ref, b2_ref,
                w3_ref, b3_ref,
                w4_ref, b4_ref,
                o_ref,
                *, hidden_dtype):
    """Transposed, lane-dense MLP: activations are (features, TILE_B)."""
    compute_dtype = w1_ref.dtype
    x = x_ref[...].astype(compute_dtype)                                  # (8, TB)

    # affine1 + (dropout1: identity in eval) + relu
    h = jnp.dot(w1_ref[...], x, preferred_element_type=hidden_dtype) + b1_ref[...]
    h = jnp.maximum(h, 0.0)                                               # (64, TB)

    # affine2 + relu
    h = jnp.dot(w2_ref[...], h.astype(compute_dtype),
                preferred_element_type=hidden_dtype) + b2_ref[...]
    h = jnp.maximum(h, 0.0)                                               # (64, TB)

    # affine3 + relu
    h = jnp.dot(w3_ref[...], h.astype(compute_dtype),
                preferred_element_type=hidden_dtype) + b3_ref[...]
    h = jnp.maximum(h, 0.0)                                               # (16, TB)

    # affine4 + tanh (always f32 accumulation / f32 tanh)
    h = jnp.dot(w4_ref[...], h.astype(compute_dtype),
                preferred_element_type=jnp.float32) + b4_ref[...]
    o_ref[...] = jnp.tanh(h).astype(o_ref.dtype)                          # (4, TB) f32


# ---------------------------------------------------------------------------
# Helpers
# ---------------------------------------------------------------------------
def _round_up(n, m):
    return ((n + m - 1) // m) * m


def _cdiv(a, b):
    return -(-a // b)


def _device_kind():
    try:
        return jax.devices()[0].device_kind.lower()
    except Exception:
        return ""


def _detect_tensorcores_per_chip():
    """Best effort: v7x packs 2 TensorCores/chip; v5e/v6e have 1."""
    kind = _device_kind()
    return 2 if ("7" in kind) else 1


def _default_hidden_dtype(compute_dtype):
    """bf16 intermediates on chips with a bf16 VALU (v6e/v7x); f32 otherwise (v5e)."""
    if jnp.dtype(compute_dtype) == jnp.dtype(jnp.float32):
        return jnp.float32
    if "v5" in _device_kind():      # v5e has no bf16 VALU/EUP: keep elementwise math in f32
        return jnp.float32
    return compute_dtype


def _choose_tile_b(B, cap, num_cores):
    """Pick a batch tile: as big as possible (fewest grid steps), but on multi-TC chips
    keep the number of steps a multiple of the core count so 'parallel' sharding balances."""
    b128 = _round_up(max(B, 1), 128)
    cap = _round_up(cap, 128)
    steps = _cdiv(b128, cap)
    if num_cores > 1:
        max_steps = max(b128 // 128, 1)          # smallest legal tile is 128 lanes
        steps = min(_round_up(steps, num_cores), max_steps)
        steps = max(steps, 1)
    return _round_up(_cdiv(b128, steps), 128)


def _vmem_budget_bytes(tile_b, x_itemsize, compute_itemsize, hidden_itemsize):
    """Rough VMEM budget: double-buffered I/O tiles + a few (64, tile_b) live intermediates
    + params + headroom. Clamped into [8 MiB, 32 MiB] (scoped default on v6e/v7x)."""
    io = 2 * 8 * tile_b * x_itemsize + 2 * 8 * tile_b * 4   # x double-buf + out double-buf (4->8 sublane pad)
    hidden = 4 * 64 * tile_b * max(hidden_itemsize, compute_itemsize)
    params_bytes = 1 << 20
    budget = io + hidden + params_bytes + (2 << 20)
    return int(min(max(budget, 8 << 20), 32 << 20))


# ---------------------------------------------------------------------------
# Forward passes
# ---------------------------------------------------------------------------
def nn_policy_forward_t(xt, params, *, compute_dtype=jnp.bfloat16, hidden_dtype=None,
                        tile_b=None, num_cores=None):
    """Feature-major forward: xt is (8, B), returns (4, B) float32.

    No wrapper-side transpose; the cast to compute_dtype happens inside the kernel, so the
    only extra HBM pass is an (optional) pad of the batch tail to a tile multiple.
    """
    F_in, B = xt.shape
    assert F_in == 8, "NNPolicy expects 8-dimensional state vectors"

    compute_dtype = jnp.dtype(compute_dtype)
    hidden_dtype = jnp.dtype(_default_hidden_dtype(compute_dtype)
                             if hidden_dtype is None else hidden_dtype)
    if num_cores is None:
        num_cores = _detect_tensorcores_per_chip()
    if tile_b is None:
        tile_b = _choose_tile_b(B, _DEFAULT_TILE_B_CAP, num_cores)
    tile_b = _round_up(tile_b, 128)
    b_pad = _round_up(B, tile_b)
    grid = (b_pad // tile_b,)

    if b_pad != B:
        xt = jnp.pad(xt, ((0, 0), (0, b_pad - B)))

    ws = [params[f"w{i}"].astype(compute_dtype) for i in range(1, 5)]
    bs = [params["b1"].astype(hidden_dtype),
          params["b2"].astype(hidden_dtype),
          params["b3"].astype(hidden_dtype),
          params["b4"].astype(jnp.float32)]

    # Weights/biases: full-array blocks, constant index_map -> fetched once, VMEM-resident.
    def const_spec(a):
        return pl.BlockSpec(a.shape, lambda i: (0, 0))

    in_specs = [pl.BlockSpec((8, tile_b), lambda i: (0, i))]              # x tile, pipelined
    for w, b in zip(ws, bs):
        in_specs += [const_spec(w), const_spec(b)]

    kernel = functools.partial(_mlp_kernel, hidden_dtype=hidden_dtype)

    # 2*(8*64 + 64*64 + 64*16 + 16*4) = 11392 flops/row; tanh = 4 transcendentals/row.
    cost = pl.CostEstimate(
        flops=11392 * b_pad,
        transcendentals=4 * b_pad,
        bytes_accessed=b_pad * (8 * xt.dtype.itemsize + 4 * 4),
    )

    out_t = pl.pallas_call(
        kernel,
        out_shape=jax.ShapeDtypeStruct((4, b_pad), jnp.float32),
        grid=grid,
        in_specs=in_specs,
        out_specs=pl.BlockSpec((4, tile_b), lambda i: (0, i)),
        compiler_params=pltpu.CompilerParams(
            # Independent batch tiles -> megacore sharding on v7x (2 TCs/chip).
            dimension_semantics=("parallel",),
            vmem_limit_bytes=_vmem_budget_bytes(
                tile_b, xt.dtype.itemsize, compute_dtype.itemsize, hidden_dtype.itemsize),
        ),
        cost_estimate=cost,
    )(xt, ws[0], bs[0], ws[1], bs[1], ws[2], bs[2], ws[3], bs[3])

    return out_t[:, :B]                                                   # (4, B)


def nn_policy_forward(x, params, *, compute_dtype=jnp.bfloat16, hidden_dtype=None,
                      tile_b=None, num_cores=None, min_pallas_batch=128):
    """Forward pass of NNPolicy (eval mode).

    x:       (B, 8) float32 state vectors; returns (B, 4) float32.
    params:  w{i} of shape (out_features, in_features) (PyTorch nn.Linear layout),
             b{i} of shape (out_features, 1), float32.
    compute_dtype: matmul-input dtype (bf16 recommended on v5e/v6e/v7x; the MXU is
             bf16-native, accumulation safety is preserved).
    hidden_dtype: dtype of hidden bias-add/ReLU intermediates; defaults to compute_dtype
             on v6e/v7x and f32 on v5e (no bf16 VALU there).
    min_pallas_batch: batches smaller than this bypass the kernel and use the fused XLA
             dot chain (faster for B < ~128; no 128-lane padding / launch overhead).

    Note: this wrapper transposes x to (8, B); large-batch callers that already keep their
    rollout buffer feature-major should call `nn_policy_forward_t` directly to avoid the
    extra HBM transpose pass.
    """
    B, F_in = x.shape
    assert F_in == 8, "NNPolicy expects 8-dimensional state vectors"

    if B < min_pallas_batch:
        # Tiny batch: plain fused XLA path (f32, at least as accurate as the kernel).
        return reference_forward(x, params)

    xt = x.T
    if jnp.dtype(compute_dtype).itemsize < x.dtype.itemsize:
        # Fuse the down-cast into the transpose to halve its HBM write traffic.
        xt = xt.astype(compute_dtype)

    out_t = nn_policy_forward_t(xt, params, compute_dtype=compute_dtype,
                                hidden_dtype=hidden_dtype, tile_b=tile_b,
                                num_cores=num_cores)
    return out_t.T                                                        # (B, 4)


# ---------------------------------------------------------------------------
# Params / reference
# ---------------------------------------------------------------------------
def init_params(seed=0):
    """Deterministic init mimicking nn.Linear default (uniform +/- 1/sqrt(fan_in)).

    Weights kept in native PyTorch layout (out_features, in_features); biases (out_features, 1).
    """
    key = jax.random.PRNGKey(seed)
    sizes = [(8, 64), (64, 64), (64, 16), (16, 4)]
    params = {}
    for i, (fan_in, fan_out) in enumerate(sizes, start=1):
        key, kw, kb = jax.random.split(key, 3)
        bound = 1.0 / jnp.sqrt(jnp.float32(fan_in))
        params[f"w{i}"] = jax.random.uniform(
            kw, (fan_out, fan_in), jnp.float32, -bound, bound)
        params[f"b{i}"] = jax.random.uniform(
            kb, (fan_out, 1), jnp.float32, -bound, bound)
    return params


def reference_forward(x, params):
    """Pure-JAX reference, identical math to the PyTorch module in eval mode."""
    h = jnp.maximum(x @ params["w1"].T + params["b1"].T, 0.0)
    h = jnp.maximum(h @ params["w2"].T + params["b2"].T, 0.0)
    h = jnp.maximum(h @ params["w3"].T + params["b3"].T, 0.0)
    return jnp.tanh(h @ params["w4"].T + params["b4"].T)


# ---------------------------------------------------------------------------
# Self-test
# ---------------------------------------------------------------------------
if __name__ == "__main__":
    params = init_params(seed=0)
    key = jax.random.PRNGKey(0)

    # Tiny batch (single-step RL use): default dispatch bypasses the kernel.
    B = 8
    x = jax.random.normal(key, (B, 8), dtype=jnp.float32)
    ref = reference_forward(x, params)
    out_small = jax.block_until_ready(nn_policy_forward(x, params))
    assert out_small.shape == (B, 4)
    assert jnp.allclose(out_small, ref, atol=1e-5, rtol=1e-5), "small-batch bypass mismatch"

    # Same tiny batch, but force the Pallas kernel (f32 exact path, padded 128-lane tile).
    out_forced = jax.block_until_ready(
        nn_policy_forward(x, params, compute_dtype=jnp.float32, min_pallas_batch=0))
    assert jnp.allclose(out_forced, ref, atol=1e-5, rtol=1e-5), "forced-kernel f32 mismatch"

    # Larger batch exercising a multi-step grid + padded tail tile, f32 exact path.
    B2 = 300
    x2 = jax.random.normal(jax.random.PRNGKey(1), (B2, 8), dtype=jnp.float32)
    ref2 = reference_forward(x2, params)
    out2 = jax.block_until_ready(
        nn_policy_forward(x2, params, compute_dtype=jnp.float32, tile_b=128,
                          min_pallas_batch=0))
    assert out2.shape == (B2, 4)
    assert jnp.allclose(out2, ref2, atol=1e-5, rtol=1e-5), "tiled f32 mismatch"

    # Default fast path: bf16 matmul inputs (+ bf16 hidden intermediates on v6e/v7x).
    out2_fast = jax.block_until_ready(
        nn_policy_forward(x2, params, min_pallas_batch=0))
    assert jnp.allclose(out2_fast, ref2, atol=6e-2, rtol=6e-2), "bf16 fast path mismatch"

    # Feature-major entry point (no wrapper transpose), f32 exact.
    out2_t = jax.block_until_ready(
        nn_policy_forward_t(x2.T, params, compute_dtype=jnp.float32))
    assert out2_t.shape == (4, B2)
    assert jnp.allclose(out2_t.T, ref2, atol=1e-5, rtol=1e-5), "feature-major mismatch"

    print("KERNEL_OK")
</pallas_src>

<mosaic_0001>
module attributes {stable_mosaic.version = 11 : i64} {
  func.func @_mlp_kernel(%arg0: i32, %arg1: memref<8x128xf32, #tpu.memory_space<vmem>>, %arg2: memref<64x8xf32, #tpu.memory_space<vmem>>, %arg3: memref<64x1xf32, #tpu.memory_space<vmem>>, %arg4: memref<64x64xf32, #tpu.memory_space<vmem>>, %arg5: memref<64x1xf32, #tpu.memory_space<vmem>>, %arg6: memref<16x64xf32, #tpu.memory_space<vmem>>, %arg7: memref<16x1xf32, #tpu.memory_space<vmem>>, %arg8: memref<4x16xf32, #tpu.memory_space<vmem>>, %arg9: memref<4x1xf32, #tpu.memory_space<vmem>>, %arg10: memref<4x128xf32, #tpu.memory_space<vmem>>) attributes {dimension_semantics = [#tpu.dimension_semantics<parallel>], iteration_bounds = array<i64: 1>, scalar_prefetch = 0 : i64, scratch_operands = 0 : i64, tpu.core_type = #tpu.core_type<tc>, window_params = [{transform_indices = @transform_0, window_bounds = array<i64: 8, 128>}, {pipeline_mode = #tpu.pipeline_mode<synchronous>, transform_indices = @transform_1, window_bounds = array<i64: 64, 8>}, {pipeline_mode = #tpu.pipeline_mode<synchronous>, transform_indices = @transform_2, window_bounds = array<i64: 64, 1>}, {pipeline_mode = #tpu.pipeline_mode<synchronous>, transform_indices = @transform_3, window_bounds = array<i64: 64, 64>}, {pipeline_mode = #tpu.pipeline_mode<synchronous>, transform_indices = @transform_4, window_bounds = array<i64: 64, 1>}, {pipeline_mode = #tpu.pipeline_mode<synchronous>, transform_indices = @transform_5, window_bounds = array<i64: 16, 64>}, {pipeline_mode = #tpu.pipeline_mode<synchronous>, transform_indices = @transform_6, window_bounds = array<i64: 16, 1>}, {pipeline_mode = #tpu.pipeline_mode<synchronous>, transform_indices = @transform_7, window_bounds = array<i64: 4, 16>}, {pipeline_mode = #tpu.pipeline_mode<synchronous>, transform_indices = @transform_8, window_bounds = array<i64: 4, 1>}, {transform_indices = @transform_9, window_bounds = array<i64: 4, 128>}]} {
    %c0 = arith.constant 0 : index
    %c0_0 = arith.constant 0 : index
    %0 = vector.load %arg1[%c0, %c0_0] : memref<8x128xf32, #tpu.memory_space<vmem>>, vector<8x128xf32>
    %c0_1 = arith.constant 0 : index
    %c0_2 = arith.constant 0 : index
    %1 = vector.load %arg2[%c0_1, %c0_2] : memref<64x8xf32, #tpu.memory_space<vmem>>, vector<64x8xf32>
    %cst = arith.constant dense<0.000000e+00> : vector<64x128xf32>
    %2 = tpu.matmul %1, %0, %cst {dimension_numbers = #tpu.dot_dimension_numbers<[1], [0], [0], [1], [0, 0, 1, 1], [], []>} : vector<64x8xf32>, vector<8x128xf32>, vector<64x128xf32> -> vector<64x128xf32>
    %c0_3 = arith.constant 0 : index
    %c0_4 = arith.constant 0 : index
    %3 = vector.load %arg3[%c0_3, %c0_4] : memref<64x1xf32, #tpu.memory_space<vmem>>, vector<64x1xf32>
    %4 = vector.broadcast %3 : vector<64x1xf32> to vector<64x128xf32>
    %5 = arith.addf %2, %4 : vector<64x128xf32>
    %cst_5 = arith.constant 0.000000e+00 : f32
    %6 = vector.broadcast %cst_5 : f32 to vector<64x128xf32>
    %7 = arith.maximumf %5, %6 : vector<64x128xf32>
    %c0_6 = arith.constant 0 : index
    %c0_7 = arith.constant 0 : index
    %8 = vector.load %arg4[%c0_6, %c0_7] : memref<64x64xf32, #tpu.memory_space<vmem>>, vector<64x64xf32>
    %cst_8 = arith.constant dense<0.000000e+00> : vector<64x128xf32>
    %9 = tpu.matmul %8, %7, %cst_8 {dimension_numbers = #tpu.dot_dimension_numbers<[1], [0], [0], [1], [0, 0, 1, 1], [], []>} : vector<64x64xf32>, vector<64x128xf32>, vector<64x128xf32> -> vector<64x128xf32>
    %c0_9 = arith.constant 0 : index
    %c0_10 = arith.constant 0 : index
    %10 = vector.load %arg5[%c0_9, %c0_10] : memref<64x1xf32, #tpu.memory_space<vmem>>, vector<64x1xf32>
    %11 = vector.broadcast %10 : vector<64x1xf32> to vector<64x128xf32>
    %12 = arith.addf %9, %11 : vector<64x128xf32>
    %cst_11 = arith.constant 0.000000e+00 : f32
    %13 = vector.broadcast %cst_11 : f32 to vector<64x128xf32>
    %14 = arith.maximumf %12, %13 : vector<64x128xf32>
    %c0_12 = arith.constant 0 : index
    %c0_13 = arith.constant 0 : index
    %15 = vector.load %arg6[%c0_12, %c0_13] : memref<16x64xf32, #tpu.memory_space<vmem>>, vector<16x64xf32>
    %cst_14 = arith.constant dense<0.000000e+00> : vector<16x128xf32>
    %16 = tpu.matmul %15, %14, %cst_14 {dimension_numbers = #tpu.dot_dimension_numbers<[1], [0], [0], [1], [0, 0, 1, 1], [], []>} : vector<16x64xf32>, vector<64x128xf32>, vector<16x128xf32> -> vector<16x128xf32>
    %c0_15 = arith.constant 0 : index
    %c0_16 = arith.constant 0 : index
    %17 = vector.load %arg7[%c0_15, %c0_16] : memref<16x1xf32, #tpu.memory_space<vmem>>, vector<16x1xf32>
    %18 = vector.broadcast %17 : vector<16x1xf32> to vector<16x128xf32>
    %19 = arith.addf %16, %18 : vector<16x128xf32>
    %cst_17 = arith.constant 0.000000e+00 : f32
    %20 = vector.broadcast %cst_17 : f32 to vector<16x128xf32>
    %21 = arith.maximumf %19, %20 : vector<16x128xf32>
    %c0_18 = arith.constant 0 : index
    %c0_19 = arith.constant 0 : index
    %22 = vector.load %arg8[%c0_18, %c0_19] : memref<4x16xf32, #tpu.memory_space<vmem>>, vector<4x16xf32>
    %cst_20 = arith.constant dense<0.000000e+00> : vector<4x128xf32>
    %23 = tpu.matmul %22, %21, %cst_20 {dimension_numbers = #tpu.dot_dimension_numbers<[1], [0], [0], [1], [0, 0, 1, 1], [], []>} : vector<4x16xf32>, vector<16x128xf32>, vector<4x128xf32> -> vector<4x128xf32>
    %c0_21 = arith.constant 0 : index
    %c0_22 = arith.constant 0 : index
    %24 = vector.load %arg9[%c0_21, %c0_22] : memref<4x1xf32, #tpu.memory_space<vmem>>, vector<4x1xf32>
    %25 = vector.broadcast %24 : vector<4x1xf32> to vector<4x128xf32>
    %26 = arith.addf %23, %25 : vector<4x128xf32>
    %27 = math.tanh %26 : vector<4x128xf32>
    %c0_23 = arith.constant 0 : index
    %c0_24 = arith.constant 0 : index
    %28 = vector.load %arg10[%c0_23, %c0_24] : memref<4x128xf32, #tpu.memory_space<vmem>>, vector<4x128xf32>
    tpu.vector_store %arg10[%c0_23, %c0_24], %27 {strides = array<i32>} : memref<4x128xf32, #tpu.memory_space<vmem>>, vector<4x128xf32>,
    return
  }
  func.func @transform_0(%arg0: i32) -> (i32, i32) {
    %c0_i32 = arith.constant 0 : i32
    %c0_i32_0 = arith.constant 0 : i32
    return %c0_i32, %arg0 : i32, i32
  }
  func.func @transform_1(%arg0: i32) -> (i32, i32) {
    %c0_i32 = arith.constant 0 : i32
    %c0_i32_0 = arith.constant 0 : i32
    %c0_i32_1 = arith.constant 0 : i32
    return %c0_i32, %c0_i32_0 : i32, i32
  }
  func.func @transform_2(%arg0: i32) -> (i32, i32) {
    %c0_i32 = arith.constant 0 : i32
    %c0_i32_0 = arith.constant 0 : i32
    %c0_i32_1 = arith.constant 0 : i32
    return %c0_i32, %c0_i32_0 : i32, i32
  }
  func.func @transform_3(%arg0: i32) -> (i32, i32) {
    %c0_i32 = arith.constant 0 : i32
    %c0_i32_0 = arith.constant 0 : i32
    %c0_i32_1 = arith.constant 0 : i32
    return %c0_i32, %c0_i32_0 : i32, i32
  }
  func.func @transform_4(%arg0: i32) -> (i32, i32) {
    %c0_i32 = arith.constant 0 : i32
    %c0_i32_0 = arith.constant 0 : i32
    %c0_i32_1 = arith.constant 0 : i32
    return %c0_i32, %c0_i32_0 : i32, i32
  }
  func.func @transform_5(%arg0: i32) -> (i32, i32) {
    %c0_i32 = arith.constant 0 : i32
    %c0_i32_0 = arith.constant 0 : i32
    %c0_i32_1 = arith.constant 0 : i32
    return %c0_i32, %c0_i32_0 : i32, i32
  }
  func.func @transform_6(%arg0: i32) -> (i32, i32) {
    %c0_i32 = arith.constant 0 : i32
    %c0_i32_0 = arith.constant 0 : i32
    %c0_i32_1 = arith.constant 0 : i32
    return %c0_i32, %c0_i32_0 : i32, i32
  }
  func.func @transform_7(%arg0: i32) -> (i32, i32) {
    %c0_i32 = arith.constant 0 : i32
    %c0_i32_0 = arith.constant 0 : i32
    %c0_i32_1 = arith.constant 0 : i32
    return %c0_i32, %c0_i32_0 : i32, i32
  }
  func.func @transform_8(%arg0: i32) -> (i32, i32) {
    %c0_i32 = arith.constant 0 : i32
    %c0_i32_0 = arith.constant 0 : i32
    %c0_i32_1 = arith.constant 0 : i32
    return %c0_i32, %c0_i32_0 : i32, i32
  }
  func.func @transform_9(%arg0: i32) -> (i32, i32) {
    %c0_i32 = arith.constant 0 : i32
    %c0_i32_0 = arith.constant 0 : i32
    return %c0_i32, %arg0 : i32, i32
  }
}

</mosaic_0001>

<bundles_post_ra>
// kernel: tpu_custom_call.1
= control target key start
LH: loop header
LB: loop body
LE: loop exit
PB: predicated region body
PF: predicated region fallthrough
CT: control target
= control target key end

     0   :  { %vm90_vm0 = vcmask 64512   ;;  %v809_v4 = vmov 0   ;;  %s1011_s0 = inlined_call_operand.vmem [shape: f32[8,128], index: 0, kind: input, shape index: {}]   ;;  %s1012_s1 = inlined_call_operand.vmem [shape: f32[64,8], index: 1, kind: input, shape index: {}]   ;;  %s1013_s2 = inlined_call_operand.vmem [shape: f32[64,1], index: 2, kind: input, shape index: {}]   ;;  %s1014_s3 = inlined_call_operand.vmem [shape: f32[64,64], index: 3, kind: input, shape index: {}]   ;;  %s1015_s4 = inlined_call_operand.vmem [shape: f32[64,1], index: 4, kind: input, shape index: {}]   ;;  %s1016_s5 = inlined_call_operand.vmem [shape: f32[16,64], index: 5, kind: input, shape index: {}]   ;;  %s1017_s6 = inlined_call_operand.vmem [shape: f32[16,1], index: 6, kind: input, shape index: {}]   ;;  %s1018_s7 = inlined_call_operand.vmem [shape: f32[4,16], index: 7, kind: input, shape index: {}]   ;;  %s1019_s8 = inlined_call_operand.vmem [shape: f32[4,1], index: 8, kind: input, shape index: {}]   ;;  %s1020_s9 = inlined_call_operand.hbm [shape: f32[4,128], index: 9, kind: output, shape index: {}]  }
   0x1   :  { %v33_v0 = vld [vmem:[%s1011_s0] sm:$0xff]  ;;  %v35_v2 = vld [vmem:[%s1012_s1 + $0x8] sm:$0xff]  ;;  %v36_v3 = vld [vmem:[%s1012_s1 + $0x10] sm:$0xff]  ;;  %781 = vset.pattern.permute.xlu0 %v809_v4  ;;  %782 = vset.pattern.permute.xlu1 %v809_v4 }
   0x2   :  { %v34_v1 = vld [vmem:[%s1012_s1] sm:$0xff]  ;;  %673 = vmatprep.subr.mxu0 %v33_v0  ;;  %v44_v6 = vld [vmem:[%s1013_s2 + $0x10] sm:$0xff]  ;;  %v37_v7 = vld [vmem:[%s1012_s1 + $0x18] sm:$0xff] }
   0x3   :  { %675 = vmatprep.mubr.msk.f32.mxu0 %vm90_vm0, %v34_v1  ;;  %674 = vmatpush3.msra.mxu0 %v33_v0  ;;  %v42_v5 = vld [vmem:[%s1013_s2] sm:$0xff]  ;;  %v43_v9 = vld [vmem:[%s1013_s2 + $0x8] sm:$0xff]  ;;  %v45_v10 = vld [vmem:[%s1013_s2 + $0x18] sm:$0xff] }
   0x4   :  { %676 = vmatmul.mubr.msk.f32.vlgmr.msra.gmra.mrb[0].mxu0 %vm90_vm0, %v35_v2  ;;  %52 = vperm.xlu0 %781, %v42_v5   ;;  %v38_v8 = vld [vmem:[%s1012_s1 + $0x20] sm:$0xff]  ;;  %v39_v11 = vld [vmem:[%s1012_s1 + $0x28] sm:$0xff]  ;;  %v40_v12 = vld [vmem:[%s1012_s1 + $0x30] sm:$0xff] }
   0x5   :  { %678 = vmatprep.mubr.msk.f32.mxu0 %vm90_vm0, %v36_v3  ;;  %62 = vperm.xlu1 %782, %v44_v6   ;;  %v46_v13 = vld [vmem:[%s1013_s2 + $0x20] sm:$0xff] }
   0x8   :  { %679 = vmatmul.mubr.msk.f32.gmra.mrb[2].mxu0 %vm90_vm0, %v37_v7  ;;  %57 = vperm.xlu0 %781, %v43_v9  }
   0x9   :  { %681 = vmatprep.mubr.msk.f32.mxu0 %vm90_vm0, %v38_v8  ;;  %67 = vperm.xlu1 %782, %v45_v10  }
   0xa   :  { %14 = vsyncpa [#allocation3], 0  ;;  %v47_v14 = vld [vmem:[%s1013_s2 + $0x28] sm:$0xff]  ;;  %v41_v15 = vld [vmem:[%s1012_s1 + $0x38] sm:$0xff]  ;;  %vm284_vm1 = vcmask 523264   ;;  %vm811_vm2 = vmmov 0  }
   0xb   :  { %v48_v16 = vld [vmem:[%s1013_s2 + $0x30] sm:$0xff]  ;;  %v49_v17 = vld [vmem:[%s1013_s2 + $0x38] sm:$0xff]  ;;  %v236_v18 = vld [vmem:[%s1015_s4] sm:$0xff]  ;;  %vm526_vm3 = vcmask 130048  }
   0xc   :  { %682 = vmatmul.mubr.msk.f32.gmra.mrb[4].mxu0 %vm90_vm0, %v39_v11  ;;  %72 = vperm.xlu0 %781, %v46_v13   ;;  %v237_v19 = vld [vmem:[%s1015_s4 + $0x8] sm:$0xff]  ;;  %v238_v20 = vld [vmem:[%s1015_s4 + $0x10] sm:$0xff]  ;;  %v239_v21 = vld [vmem:[%s1015_s4 + $0x18] sm:$0xff] }
   0xd   :  { %684 = vmatprep.mubr.msk.f32.mxu0 %vm90_vm0, %v40_v12  ;;  %77 = vperm.xlu1 %782, %v47_v14   ;;  %v240_v22 = vld [vmem:[%s1015_s4 + $0x20] sm:$0xff]  ;;  %v241_v23 = vld [vmem:[%s1015_s4 + $0x28] sm:$0xff]  ;;  %v242_v24 = vld [vmem:[%s1015_s4 + $0x30] sm:$0xff] }
   0xe   :  { %v243_v25 = vld [vmem:[%s1015_s4 + $0x38] sm:$0xff]  ;;  %v424_v26 = vld [vmem:[%s1017_s6] sm:$0xff]  ;;  %v425_v27 = vld [vmem:[%s1017_s6 + $0x8] sm:$0xff] }
   0xf   :  { %v520_v28 = vld [vmem:[%s1019_s8] sm:$0xf]  ;;  %v229_v2 = vld [vmem:[%s1014_s3 + $0x8] sm:$0xff]  ;;  %v230_v3 = vld [vmem:[%s1014_s3 + $0x10] sm:$0xff] }
  0x10   :  { %685 = vmatmul.mubr.msk.f32.gmra.mrb[6].mxu0 %vm90_vm0, %v41_v15  ;;  %82 = vperm.xlu0 %781, %v48_v16   ;;  %v228_v29 = vld [vmem:[%s1014_s3] sm:$0xff]  ;;  %v231_v4 = vld [vmem:[%s1014_s3 + $0x18] sm:$0xff]  ;;  %v233_v6 = vld [vmem:[%s1014_s3 + $0x28] sm:$0xff] }
  0x11   :  { %87 = vperm.xlu1 %782, %v49_v17   ;;  %703 = vmatprep.mubr.msk.f32.mxu1 %vm284_vm1, %v228_v29  ;;  %v232_v5 = vld [vmem:[%s1014_s3 + $0x20] sm:$0xff]  ;;  %v234_v7 = vld [vmem:[%s1014_s3 + $0x30] sm:$0xff]  ;;  %v235_v8 = vld [vmem:[%s1014_s3 + $0x38] sm:$0xff] }
  0x12   :  { %v422_v9 = vld [vmem:[%s1016_s5] sm:$0xff] }
  0x13   :  { %731 = vmatprep.mubr.msk.f32.mxu0 %vm284_vm1, %v422_v9 }
  0x14   :  { %246 = vperm.xlu0 %781, %v236_v18  }
  0x15   :  { %251 = vperm.xlu1 %782, %v237_v19  }
  0x18   :  { %256 = vperm.xlu0 %781, %v238_v20  }
  0x19   :  { %261 = vperm.xlu1 %782, %v239_v21  }
  0x1c   :  { %266 = vperm.xlu0 %781, %v240_v22  }
  0x1d   :  { %271 = vperm.xlu1 %782, %v241_v23  }
  0x20   :  { %276 = vperm.xlu0 %781, %v242_v24  }
  0x21   :  { %281 = vperm.xlu1 %782, %v243_v25  }
  0x24   :  { %428 = vperm.xlu0 %781, %v424_v26  }
  0x25   :  { %433 = vperm.xlu1 %782, %v425_v27  }
  0x28   :  { %523 = vperm.xlu0 %781, %v520_v28  }
  0x83   :  { %v53_v30 = vpop.permute.xlu0 %52 }
  0x84   :  { %v63_v31 = vpop.permute.xlu1 %62 }
  0x87   :  { %v58_v32 = vpop.permute.xlu0 %57 }
  0x88   :  { %v68_v33 = vpop.permute.xlu1 %67 }
  0x8b   :  { %v73_v46 = vpop.permute.xlu0 %72 }
  0x8c   :  { %v78_v43 = vpop.permute.xlu1 %77 }
  0x8f   :  { %v83_v58 = vpop.permute.xlu0 %82 }
  0x90   :  { %v88_v55 = vpop.permute.xlu1 %87 }
  0x93   :  { %v247_v11 = vpop.permute.xlu0 %246 }
  0x94   :  { %v252_v10 = vpop.permute.xlu1 %251 }
  0x97   :  { %v257_v14 = vpop.permute.xlu0 %256 }
  0x98   :  { %v262_v12 = vpop.permute.xlu1 %261 }
  0x9b   :  { %v267_v26 = vpop.permute.xlu0 %266 }
  0x9c   :  { %v272_v23 = vpop.permute.xlu1 %271 }
  0xd7   :  { %v677_v34 = vpop.f32.mrb[0].mxu0 }
  0xd8   :  { %v187_v35 = vadd.f32 %v677_v34, %v58_v32  ;;  %v181_v36 = vpop.f32.mrb[1].mxu0 }
  0xd9   :  { %v182_v37 = vadd.f32 %v181_v36, %v53_v30 }
  0xda   :  { %v221_v38 = vmax.f32 %v187_v35, 0.0  ;;  %v282_v35 = vpop.permute.xlu1 %281 }
  0xdb   :  { %v220_v39 = vmax.f32 %v182_v37, 0.0  ;;  %v680_v40 = vpop.f32.mrb[2].mxu0 }
  0xdc   :  { %v197_v41 = vadd.f32 %v680_v40, %v68_v33  ;;  %v191_v42 = vpop.f32.mrb[3].mxu0 }
  0xdd   :  { %v192_v44 = vadd.f32 %v191_v42, %v63_v31  ;;  %v741_v45 = vpack.c.bf16 %v221_v38, %v220_v39  ;;  %v277_v38 = vpop.permute.xlu0 %276 }
  0xde   :  { %v223_v47 = vmax.f32 %v197_v41, 0.0 }
  0xdf   :  { %v222_v48 = vmax.f32 %v192_v44, 0.0  ;;  %v683_v49 = vpop.f32.mrb[4].mxu0  ;;  %742 = vmatprep.subr.bf16.mxu1 %v741_v45 }
  0xe0   :  { %v207_v50 = vadd.f32 %v683_v49, %v78_v43  ;;  %v201_v51 = vpop.f32.mrb[5].mxu0  ;;  %744 = vmatpush3.bf16.msra.mxu1 %v741_v45  ;;  %v434_v49 = vpop.permute.xlu1 %433 }
  0xe1   :  { %v745_v52 = vpack.c.bf16 %v223_v47, %v222_v48  ;;  %v202_v53 = vadd.f32 %v201_v51, %v73_v46  ;;  %v423_v46 = vld [vmem:[%s1016_s5 + $0x8] sm:$0xff]  ;;  %v810_v47 = vmov 0.0|0.0   ;;  %v812_v48 = vmov 0.0   ;;  %v429_v51 = vpop.permute.xlu0 %428  ;;  %s813_s5 = smov [#allocation2]  }
  0xe2   :  { %v225_v54 = vmax.f32 %v207_v50, 0.0  ;;  %s608_s13 = sshll.u32 %s813_s5, 4  ;;  %s609_s13 = int_to_ptr.vmem [resolvable:$true] %s608_s13 }
  0xe3   :  { %v224_v56 = vmax.f32 %v202_v53, 0.0  ;;  %v686_v57 = vpop.f32.mrb[6].mxu0  ;;  %746 = vmatprep.subr.bf16.mxu1 %v745_v52  ;;  %s785_s14 = scalar_lea.vmem %s609_s13, 64  ;;  %p790_p1 = scmp.lt.s32.totalorder %s609_s13, %s609_s13 }
  0xe4   :  { %v217_v59 = vadd.f32 %v686_v57, %v88_v55  ;;  %v211_v60 = vpop.f32.mrb[7].mxu0  ;;  %748 = vmatpush3.bf16.msra.mxu1 %v745_v52  ;;  %p786_p0 = scmp.ne.s32.totalorder %s609_s13, %s785_s14  ;;  %p791_p2 = scmp.lt.s32.totalorder %s785_s14, %s785_s14 }
  0xe5   :  { %v749_v61 = vpack.c.bf16 %v225_v54, %v224_v56  ;;  %v212_v62 = vadd.f32 %v211_v60, %v83_v58  ;;  %v519_v58 = vld [vmem:[%s1018_s7] sm:$0xf] }
  0xe6   :  { %v227_v63 = vmax.f32 %v217_v59, 0.0  ;;  %v524_v59 = vpop.permute.xlu0 %523  ;;  %p792_p3 = por %p791_p2, %p790_p1 }
  0xe7   :  { %v226_v0 = vmax.f32 %v212_v62, 0.0  ;;  %750 = vmatprep.subr.bf16.mxu1 %v749_v61 }
  0xe8   :  { %752 = vmatpush3.bf16.msra.mxu1 %v749_v61  ;;  %p793_p4 = pnand %p792_p3, %p786_p0 }
  0xe9   :  { %v753_v1 = vpack.c.bf16 %v227_v63, %v226_v0 }
  0xeb   :  { %754 = vmatprep.subr.bf16.mxu1 %v753_v1 }
  0xec   :  { %756 = vmatpush3.bf16.msra.mxu1 %v753_v1 }
  0xef   :  { %704 = vmatmul.mubr.msk.f32.vlgmr.msra.gmra.mrb[0].mxu1 %vm284_vm1, %v229_v2 }
  0xf0   :  { %706 = vmatprep.mubr.msk.f32.mxu1 %vm284_vm1, %v230_v3 }
  0xf3   :  { %707 = vmatmul.mubr.msk.f32.gmra.mrb[2].mxu1 %vm284_vm1, %v231_v4 }
  0xf4   :  { %709 = vmatprep.mubr.msk.f32.mxu1 %vm284_vm1, %v232_v5 }
  0xf7   :  { %710 = vmatmul.mubr.msk.f32.gmra.mrb[4].mxu1 %vm284_vm1, %v233_v6 }
  0xf8   :  { %712 = vmatprep.mubr.msk.f32.mxu1 %vm284_vm1, %v234_v7 }
  0xfb   :  { %713 = vmatmul.mubr.msk.f32.gmra.mrb[6].mxu1 %vm284_vm1, %v235_v8 }
 0x1c2   :  { %v705_v13 = vpop.f32.mrb[0].mxu1 }
 0x1c3   :  { %v381_v15 = vadd.f32 %v705_v13, %v252_v10  ;;  %v375_v16 = vpop.f32.mrb[1].mxu1 }
 0x1c4   :  { %v376_v17 = vadd.f32 %v375_v16, %v247_v11 }
 0x1c5   :  { %v415_v18 = vmax.f32 %v381_v15, 0.0 }
 0x1c6   :  { %v414_v19 = vmax.f32 %v376_v17, 0.0  ;;  %v708_v20 = vpop.f32.mrb[2].mxu1 }
 0x1c7   :  { %v391_v21 = vadd.f32 %v708_v20, %v262_v12  ;;  %v385_v22 = vpop.f32.mrb[3].mxu1 }
 0x1c8   :  { %v757_v24 = vpack.c.bf16 %v415_v18, %v414_v19  ;;  %v386_v25 = vadd.f32 %v385_v22, %v257_v14 }
 0x1c9   :  { %v417_v27 = vmax.f32 %v391_v21, 0.0 }
 0x1ca   :  { %v416_v28 = vmax.f32 %v386_v25, 0.0  ;;  %v711_v29 = vpop.f32.mrb[4].mxu1  ;;  %758 = vmatprep.subr.bf16.mxu0 %v757_v24 }
 0x1cb   :  { %v401_v30 = vadd.f32 %v711_v29, %v272_v23  ;;  %v395_v31 = vpop.f32.mrb[5].mxu1  ;;  %760 = vmatpush3.bf16.msra.mxu0 %v757_v24 }
 0x1cc   :  { %v761_v32 = vpack.c.bf16 %v417_v27, %v416_v28  ;;  %v396_v33 = vadd.f32 %v395_v31, %v267_v26 }
 0x1cd   :  { %v419_v34 = vmax.f32 %v401_v30, 0.0 }
 0x1ce   :  { %v418_v36 = vmax.f32 %v396_v33, 0.0  ;;  %v714_v37 = vpop.f32.mrb[6].mxu1  ;;  %762 = vmatprep.subr.bf16.mxu0 %v761_v32 }
 0x1cf   :  { %v411_v39 = vadd.f32 %v714_v37, %v282_v35  ;;  %v405_v40 = vpop.f32.mrb[7].mxu1  ;;  %764 = vmatpush3.bf16.msra.mxu0 %v761_v32 }
 0x1d0   :  { %v765_v41 = vpack.c.bf16 %v419_v34, %v418_v36  ;;  %v406_v42 = vadd.f32 %v405_v40, %v277_v38 }
 0x1d1   :  { %v421_v43 = vmax.f32 %v411_v39, 0.0 }
 0x1d2   :  { %v420_v44 = vmax.f32 %v406_v42, 0.0  ;;  %766 = vmatprep.subr.bf16.mxu0 %v765_v41 }
 0x1d3   :  { %768 = vmatpush3.bf16.msra.mxu0 %v765_v41 }
 0x1d4   :  { %v769_v45 = vpack.c.bf16 %v421_v43, %v420_v44 }
 0x1d6   :  { %770 = vmatprep.subr.bf16.mxu0 %v769_v45 }
 0x1d7   :  { %772 = vmatpush3.bf16.msra.mxu0 %v769_v45 }
 0x1d8   :  { %773 = vmatprep.subr.bf16.mxu0 %v810_v47 }
 0x1da   :  { %732 = vmatmul.mubr.msk.f32.vlgmr.msra.gmra.mrb[8].mxu0 %vm284_vm1, %v423_v46 }
 0x1db   :  { %738 = vmatprep.mubr.msk.f32.mxu0 %vm811_vm2, %v812_v48 }
 0x2ad   :  { %v733_v50 = vpop.f32.mrb[8].mxu0 }
 0x2ae   :  { %v514_v52 = vadd.f32 %v733_v50, %v434_v49  ;;  %v508_v53 = vpop.f32.mrb[9].mxu0 }
 0x2af   :  { %v509_v54 = vadd.f32 %v508_v53, %v429_v51 }
 0x2b0   :  { %v518_v55 = vmax.f32 %v514_v52, 0.0 }
 0x2b1   :  { %v517_v56 = vmax.f32 %v509_v54, 0.0 }
 0x2b3   :  { %v774_v57 = vpack.c.bf16 %v518_v55, %v517_v56 }
 0x2b5   :  { %775 = vmatpush3.bf16.msra.mxu0 %v774_v57 }
 0x2b8   :  { %739 = vmatmul.mubr.msk.f32.vlgmr.msra.gmra.mrb[10].mxu0 %vm526_vm3, %v519_v58 }
 0x38b   :  { %v596_v60 = vpop.f32.mrb[10].mxu0 }
 0x38c   :  { %v597_v61 = vadd.f32 %v596_v60, %v524_v59  ;;  %v740_v62 = vpop.f32.mrb[11].mxu0 }
 0x38e   :  { %783 = vtanh.f32 %v597_v61 }
 0x398   :  { %v784_v63 = vpop.eup %783 }
 0x399   :  { %601 = vst [vmem:[#allocation2] sm:$0xf] %v784_v63 }
 0x39a   :  { %796 = shalt.err (!%p793_p4)
}
 0x39b   :  { %s797_s16 = scalar_lea.hbm %s1020_s9, 64 }
 0x39c   :  { %p798_p5 = scmp.ne.s32.totalorder %s1020_s9, %s797_s16  ;;  %p801_p6 = scmp.lt.u32.totalorder %s797_s16, %s1020_s9 }
 0x39e   :  { %p803_p7 = pnand %p801_p6, %p798_p5 }
 0x3a0   :  { %806 = shalt.err (!%p803_p7)
}
 0x3a1   :  { %611 = dma.vmem_to_hbm [thread:$0]  %s609_s13, 64, %s1020_s9, [#allocation3]  }
 0x3a2   :  { %807 = dma.done.wait [#allocation3], 64  }
 0x3a3   :  { %808 = vsyncadd [#allocation3], 4294967232 }
 0x3a4   :  { %615 = vsyncpa [#allocation3], 1 }

</bundles_post_ra>
